<compile_context>
chip_gen: v7x
topology: tpu7x:2x2x1
jax: 0.10.0
libtpu: 0.0.40
codegen_flags: <defaults>
</compile_context>

<pallas_src>
import functools

import jax
import jax.numpy as jnp
from jax import lax
from jax.experimental import pallas as pl
from jax.experimental.pallas import tpu as pltpu


def _round_up(v, m):
    return (v + m - 1) // m * m


def _mlp_kernel(x_ref, w_in_ref, b_in_ref, w_hid_ref, b_hid_ref,
                w_out_ref, b_out_ref, o_ref, *, num_inner_layers):
    """One batch tile. Activations are (H_pad, TB): features on sublanes,
    batch on the lane axis (lane-dense input and output streams)."""
    x = x_ref[...]                                              # (1, TB)

    # --- first layer: Linear(1 -> H) + ReLU (outer product, VPU) ------------
    h = jnp.maximum(w_in_ref[...] * x + b_in_ref[...], 0.0)     # (H_pad, TB)

    # --- hidden layers: Linear(H -> H) + ReLU (MXU matmuls) -----------------
    if num_inner_layers > 0:
        def body(i, h):
            w = w_hid_ref[i]                                    # (H_pad, H_pad)
            b = b_hid_ref[i]                                    # (H_pad, 1)
            h = jnp.dot(w, h, preferred_element_type=jnp.float32) + b
            return jnp.maximum(h, 0.0)

        h = lax.fori_loop(0, num_inner_layers, body, h,
                          unroll=num_inner_layers <= 4)

    # --- output layer: Linear(H -> 1), sublane (XLU) reduction, lane-dense --
    out = jnp.sum(h * w_out_ref[...], axis=0, keepdims=True) + b_out_ref[...]
    o_ref[...] = out.astype(o_ref.dtype)                        # (1, TB)


def nonlinear_fit_forward(x, params, *, batch_tile=512):
    """x: (B, 1) float32.  params: PyTorch-layout weights (see init_params)."""
    w_in, b_in = params["w_in"], params["b_in"]        # (H, 1), (H,)
    w_hid, b_hid = params["w_hid"], params["b_hid"]    # (L-1, H, H), (L-1, H)
    w_out, b_out = params["w_out"], params["b_out"]    # (1, H), (1,)

    B = x.shape[0]
    H = w_in.shape[0]
    n_inner = w_hid.shape[0]

    # --- pad the feature dim to a lane multiple; zero padding is exact ------
    H_pad = _round_up(H, 128)
    pad_h = H_pad - H

    w_in_k = jnp.pad(w_in, ((0, pad_h), (0, 0)))                     # (H_pad, 1)
    b_in_k = jnp.pad(b_in.reshape(H, 1), ((0, pad_h), (0, 0)))       # (H_pad, 1)
    w_out_k = jnp.pad(w_out.reshape(H, 1), ((0, pad_h), (0, 0)))     # (H_pad, 1)
    b_out_k = b_out.reshape(1, 1)                                    # (1, 1)
    if n_inner > 0:
        w_hid_k = jnp.pad(w_hid, ((0, 0), (0, pad_h), (0, pad_h)))   # (n, H_pad, H_pad)
        b_hid_k = jnp.pad(b_hid, ((0, 0), (0, pad_h)))[:, :, None]   # (n, H_pad, 1)
    else:
        # Dummy (unused) refs so the kernel signature stays fixed.
        w_hid_k = jnp.zeros((1, H_pad, H_pad), jnp.float32)
        b_hid_k = jnp.zeros((1, H_pad, 1), jnp.float32)

    # --- batch tiling: batch on the lane axis, large lane-dense tiles -------
    tb = _round_up(min(batch_tile, _round_up(B, 128)), 128)
    B_pad = _round_up(B, tb)
    x_row = jnp.pad(x[:, 0], (0, B_pad - B)).reshape(1, B_pad)       # (1, B_pad)
    grid = (B_pad // tb,)

    def const_spec(a):  # whole-array block, constant index -> stays resident
        return pl.BlockSpec(a.shape, lambda i, _nd=a.ndim: (0,) * _nd)

    # --- scheduling hints ----------------------------------------------------
    flops = 2 * B_pad * H_pad * (2 + n_inner * H_pad)
    weight_bytes = 4 * (w_in_k.size + b_in_k.size + w_hid_k.size
                        + b_hid_k.size + w_out_k.size + b_out_k.size)
    cost = pl.CostEstimate(flops=flops, transcendentals=0,
                           bytes_accessed=weight_bytes + 4 * 2 * B_pad)

    # VMEM budget: resident weights (double-buffer slack), streamed x/out
    # tiles, and a few live (H_pad, tb) activation copies.  Clamped so the
    # request stays valid on v7x's 64 MiB VMEM.
    act_bytes = 4 * H_pad * tb
    vmem_limit = int(min(max(2 * weight_bytes + 4 * act_bytes + (4 << 20),
                             16 << 20), 56 << 20))

    kernel = functools.partial(_mlp_kernel, num_inner_layers=n_inner)

    out_row = pl.pallas_call(
        kernel,
        out_shape=jax.ShapeDtypeStruct((1, B_pad), jnp.float32),
        grid=grid,
        in_specs=[
            pl.BlockSpec((1, tb), lambda i: (0, i)),   # x streams over batch
            const_spec(w_in_k),
            const_spec(b_in_k),
            const_spec(w_hid_k),
            const_spec(b_hid_k),
            const_spec(w_out_k),
            const_spec(b_out_k),
        ],
        out_specs=pl.BlockSpec((1, tb), lambda i: (0, i)),
        compiler_params=pltpu.CompilerParams(
            dimension_semantics=("parallel",),
            vmem_limit_bytes=vmem_limit),
        cost_estimate=cost,
    )(x_row, w_in_k, b_in_k, w_hid_k, b_hid_k, w_out_k, b_out_k)

    return out_row[0, :B].reshape(B, 1)


def init_params(key, hidden_layers, hidden_layer_nodes):
    """Deterministic params in PyTorch (out_features, in_features) layout."""
    if not (isinstance(hidden_layers, int) and hidden_layers > 0):
        raise Exception("Number of hidden layers must be an integer greater than 0.")
    if not (isinstance(hidden_layer_nodes, int) and hidden_layer_nodes > 0):
        raise Exception("Number of hidden layer nodes must be an integer greater than 0.")

    H, L = hidden_layer_nodes, hidden_layers
    n_inner = L - 1
    keys = jax.random.split(key, 6)
    scale = 0.5
    return {
        "w_in":  scale * jax.random.normal(keys[0], (H, 1), jnp.float32),
        "b_in":  scale * jax.random.normal(keys[1], (H,), jnp.float32),
        "w_hid": (scale * jax.random.normal(keys[2], (n_inner, H, H), jnp.float32)
                  if n_inner > 0 else jnp.zeros((0, H, H), jnp.float32)),
        "b_hid": (scale * jax.random.normal(keys[3], (n_inner, H), jnp.float32)
                  if n_inner > 0 else jnp.zeros((0, H), jnp.float32)),
        "w_out": scale * jax.random.normal(keys[4], (1, H), jnp.float32),
        "b_out": scale * jax.random.normal(keys[5], (1,), jnp.float32),
    }


def reference_forward(x, params):
    """Pure-JAX reference of the same forward pass (PyTorch layout)."""
    h = jnp.maximum(x @ params["w_in"].T + params["b_in"], 0.0)
    for i in range(params["w_hid"].shape[0]):
        h = jnp.maximum(h @ params["w_hid"][i].T + params["b_hid"][i], 0.0)
    return h @ params["w_out"].T + params["b_out"]


if __name__ == "__main__":
    hidden_layers = 3
    hidden_layer_nodes = 32
    batch = 8

    key = jax.random.PRNGKey(0)
    k_x, k_p = jax.random.split(key)
    x = jax.random.normal(k_x, (batch, 1), jnp.float32)
    params = init_params(k_p, hidden_layers, hidden_layer_nodes)

    out = nonlinear_fit_forward(x, params)
    out = jax.block_until_ready(out)

    ref = reference_forward(x, params)
    assert out.shape == (batch, 1)
    assert jnp.allclose(out, ref, atol=1e-5, rtol=1e-5)
    print("KERNEL_OK")
</pallas_src>

<mosaic_0001>
module attributes {stable_mosaic.version = 11 : i64} {
  func.func @_mlp_kernel(%arg0: i32, %arg1: memref<1x128xf32, #tpu.memory_space<vmem>>, %arg2: memref<128x1xf32, #tpu.memory_space<vmem>>, %arg3: memref<128x1xf32, #tpu.memory_space<vmem>>, %arg4: memref<2x128x128xf32, #tpu.memory_space<vmem>>, %arg5: memref<2x128x1xf32, #tpu.memory_space<vmem>>, %arg6: memref<128x1xf32, #tpu.memory_space<vmem>>, %arg7: memref<1x1xf32, #tpu.memory_space<vmem>>, %arg8: memref<1x128xf32, #tpu.memory_space<vmem>>) attributes {dimension_semantics = [#tpu.dimension_semantics<parallel>], iteration_bounds = array<i64: 1>, scalar_prefetch = 0 : i64, scratch_operands = 0 : i64, tpu.core_type = #tpu.core_type<tc>, window_params = [{transform_indices = @transform_0, window_bounds = array<i64: 1, 128>}, {pipeline_mode = #tpu.pipeline_mode<synchronous>, transform_indices = @transform_1, window_bounds = array<i64: 128, 1>}, {pipeline_mode = #tpu.pipeline_mode<synchronous>, transform_indices = @transform_2, window_bounds = array<i64: 128, 1>}, {pipeline_mode = #tpu.pipeline_mode<synchronous>, transform_indices = @transform_3, window_bounds = array<i64: 2, 128, 128>}, {pipeline_mode = #tpu.pipeline_mode<synchronous>, transform_indices = @transform_4, window_bounds = array<i64: 2, 128, 1>}, {pipeline_mode = #tpu.pipeline_mode<synchronous>, transform_indices = @transform_5, window_bounds = array<i64: 128, 1>}, {pipeline_mode = #tpu.pipeline_mode<synchronous>, transform_indices = @transform_6, window_bounds = array<i64: 1, 1>}, {transform_indices = @transform_7, window_bounds = array<i64: 1, 128>}]} {
    %c0 = arith.constant 0 : index
    %c0_0 = arith.constant 0 : index
    %0 = vector.load %arg1[%c0, %c0_0] : memref<1x128xf32, #tpu.memory_space<vmem>>, vector<1x128xf32>
    %c0_1 = arith.constant 0 : index
    %c0_2 = arith.constant 0 : index
    %1 = vector.load %arg2[%c0_1, %c0_2] : memref<128x1xf32, #tpu.memory_space<vmem>>, vector<128x1xf32>
    %2 = vector.broadcast %1 : vector<128x1xf32> to vector<128x128xf32>
    %3 = vector.broadcast %0 : vector<1x128xf32> to vector<128x128xf32>
    %4 = arith.mulf %2, %3 : vector<128x128xf32>
    %c0_3 = arith.constant 0 : index
    %c0_4 = arith.constant 0 : index
    %5 = vector.load %arg3[%c0_3, %c0_4] : memref<128x1xf32, #tpu.memory_space<vmem>>, vector<128x1xf32>
    %6 = vector.broadcast %5 : vector<128x1xf32> to vector<128x128xf32>
    %7 = arith.addf %4, %6 : vector<128x128xf32>
    %cst = arith.constant 0.000000e+00 : f32
    %8 = vector.broadcast %cst : f32 to vector<128x128xf32>
    %9 = arith.maximumf %7, %8 : vector<128x128xf32>
    %c0_i32 = arith.constant 0 : i32
    %10 = arith.index_cast %c0_i32 : i32 to index
    %c0_5 = arith.constant 0 : index
    %c0_6 = arith.constant 0 : index
    %11 = vector.load %arg4[%10, %c0_5, %c0_6] : memref<2x128x128xf32, #tpu.memory_space<vmem>>, vector<1x128x128xf32>
    %12 = vector.shape_cast %11 : vector<1x128x128xf32> to vector<128x128xf32>
    %13 = arith.index_cast %c0_i32 : i32 to index
    %c0_7 = arith.constant 0 : index
    %c0_8 = arith.constant 0 : index
    %14 = vector.load %arg5[%13, %c0_7, %c0_8] : memref<2x128x1xf32, #tpu.memory_space<vmem>>, vector<1x128x1xf32>
    %15 = vector.shape_cast %14 : vector<1x128x1xf32> to vector<128x1xf32>
    %cst_9 = arith.constant dense<0.000000e+00> : vector<128x128xf32>
    %16 = tpu.matmul %12, %9, %cst_9 {dimension_numbers = #tpu.dot_dimension_numbers<[1], [0], [0], [1], [0, 0, 1, 1], [], []>} : vector<128x128xf32>, vector<128x128xf32>, vector<128x128xf32> -> vector<128x128xf32>
    %17 = vector.broadcast %15 : vector<128x1xf32> to vector<128x128xf32>
    %18 = arith.addf %16, %17 : vector<128x128xf32>
    %cst_10 = arith.constant 0.000000e+00 : f32
    %19 = vector.broadcast %cst_10 : f32 to vector<128x128xf32>
    %20 = arith.maximumf %18, %19 : vector<128x128xf32>
    %c1_i32 = arith.constant 1 : i32
    %21 = arith.index_cast %c1_i32 : i32 to index
    %c0_11 = arith.constant 0 : index
    %c0_12 = arith.constant 0 : index
    %22 = vector.load %arg4[%21, %c0_11, %c0_12] : memref<2x128x128xf32, #tpu.memory_space<vmem>>, vector<1x128x128xf32>
    %23 = vector.shape_cast %22 : vector<1x128x128xf32> to vector<128x128xf32>
    %24 = arith.index_cast %c1_i32 : i32 to index
    %c0_13 = arith.constant 0 : index
    %c0_14 = arith.constant 0 : index
    %25 = vector.load %arg5[%24, %c0_13, %c0_14] : memref<2x128x1xf32, #tpu.memory_space<vmem>>, vector<1x128x1xf32>
    %26 = vector.shape_cast %25 : vector<1x128x1xf32> to vector<128x1xf32>
    %cst_15 = arith.constant dense<0.000000e+00> : vector<128x128xf32>
    %27 = tpu.matmul %23, %20, %cst_15 {dimension_numbers = #tpu.dot_dimension_numbers<[1], [0], [0], [1], [0, 0, 1, 1], [], []>} : vector<128x128xf32>, vector<128x128xf32>, vector<128x128xf32> -> vector<128x128xf32>
    %28 = vector.broadcast %26 : vector<128x1xf32> to vector<128x128xf32>
    %29 = arith.addf %27, %28 : vector<128x128xf32>
    %cst_16 = arith.constant 0.000000e+00 : f32
    %30 = vector.broadcast %cst_16 : f32 to vector<128x128xf32>
    %31 = arith.maximumf %29, %30 : vector<128x128xf32>
    %c2_i32 = arith.constant 2 : i32
    %c0_17 = arith.constant 0 : index
    %c0_18 = arith.constant 0 : index
    %32 = vector.load %arg6[%c0_17, %c0_18] : memref<128x1xf32, #tpu.memory_space<vmem>>, vector<128x1xf32>
    %33 = vector.broadcast %32 : vector<128x1xf32> to vector<128x128xf32>
    %34 = arith.mulf %31, %33 : vector<128x128xf32>
    %cst_19 = arith.constant dense<0.000000e+00> : vector<128xf32>
    %35 = vector.multi_reduction <add>, %34, %cst_19 [0] : vector<128x128xf32> to vector<128xf32>
    %36 = vector.shape_cast %35 : vector<128xf32> to vector<1x128xf32>
    %c0_20 = arith.constant 0 : index
    %c0_21 = arith.constant 0 : index
    %37 = vector.load %arg7[%c0_20, %c0_21] : memref<1x1xf32, #tpu.memory_space<vmem>>, vector<1x1xf32>
    %38 = vector.broadcast %37 : vector<1x1xf32> to vector<1x128xf32>
    %39 = arith.addf %36, %38 : vector<1x128xf32>
    %c0_22 = arith.constant 0 : index
    %c0_23 = arith.constant 0 : index
    %40 = vector.load %arg8[%c0_22, %c0_23] : memref<1x128xf32, #tpu.memory_space<vmem>>, vector<1x128xf32>
    tpu.vector_store %arg8[%c0_22, %c0_23], %39 {strides = array<i32>} : memref<1x128xf32, #tpu.memory_space<vmem>>, vector<1x128xf32>,
    return
  }
  func.func @transform_0(%arg0: i32) -> (i32, i32) {
    %c0_i32 = arith.constant 0 : i32
    %c0_i32_0 = arith.constant 0 : i32
    return %c0_i32, %arg0 : i32, i32
  }
  func.func @transform_1(%arg0: i32) -> (i32, i32) {
    %c0_i32 = arith.constant 0 : i32
    %c0_i32_0 = arith.constant 0 : i32
    %c0_i32_1 = arith.constant 0 : i32
    return %c0_i32, %c0_i32_0 : i32, i32
  }
  func.func @transform_2(%arg0: i32) -> (i32, i32) {
    %c0_i32 = arith.constant 0 : i32
    %c0_i32_0 = arith.constant 0 : i32
    %c0_i32_1 = arith.constant 0 : i32
    return %c0_i32, %c0_i32_0 : i32, i32
  }
  func.func @transform_3(%arg0: i32) -> (i32, i32, i32) {
    %c0_i32 = arith.constant 0 : i32
    %c0_i32_0 = arith.constant 0 : i32
    %c0_i32_1 = arith.constant 0 : i32
    %c0_i32_2 = arith.constant 0 : i32
    return %c0_i32, %c0_i32_0, %c0_i32_1 : i32, i32, i32
  }
  func.func @transform_4(%arg0: i32) -> (i32, i32, i32) {
    %c0_i32 = arith.constant 0 : i32
    %c0_i32_0 = arith.constant 0 : i32
    %c0_i32_1 = arith.constant 0 : i32
    %c0_i32_2 = arith.constant 0 : i32
    return %c0_i32, %c0_i32_0, %c0_i32_1 : i32, i32, i32
  }
  func.func @transform_5(%arg0: i32) -> (i32, i32) {
    %c0_i32 = arith.constant 0 : i32
    %c0_i32_0 = arith.constant 0 : i32
    %c0_i32_1 = arith.constant 0 : i32
    return %c0_i32, %c0_i32_0 : i32, i32
  }
  func.func @transform_6(%arg0: i32) -> (i32, i32) {
    %c0_i32 = arith.constant 0 : i32
    %c0_i32_0 = arith.constant 0 : i32
    %c0_i32_1 = arith.constant 0 : i32
    return %c0_i32, %c0_i32_0 : i32, i32
  }
  func.func @transform_7(%arg0: i32) -> (i32, i32) {
    %c0_i32 = arith.constant 0 : i32
    %c0_i32_0 = arith.constant 0 : i32
    return %c0_i32, %arg0 : i32, i32
  }
}

</mosaic_0001>

<bundles_post_ra>
// kernel: tpu_custom_call.1
= control target key start
LH: loop header
LB: loop body
LE: loop exit
PB: predicated region body
PF: predicated region fallthrough
CT: control target
= control target key end

     0   :  { %s1698_s0 = inlined_call_operand.vmem [shape: f32[1,128], index: 0, kind: input, shape index: {}]   ;;  %s1699_s1 = inlined_call_operand.vmem [shape: f32[128,1], index: 1, kind: input, shape index: {}]   ;;  %s1700_s2 = inlined_call_operand.vmem [shape: f32[128,1], index: 2, kind: input, shape index: {}]   ;;  %s1701_s3 = inlined_call_operand.vmem [shape: f32[2,128,128], index: 3, kind: input, shape index: {}]   ;;  %s1702_s4 = inlined_call_operand.vmem [shape: f32[2,128,1], index: 4, kind: input, shape index: {}]   ;;  %s1703_s5 = inlined_call_operand.vmem [shape: f32[128,1], index: 5, kind: input, shape index: {}]   ;;  %s1704_s6 = inlined_call_operand.<no memory space> [shape: f32[1,1], index: 6, kind: input, shape index: {}]   ;;  %s1705_s7 = inlined_call_operand.hbm [shape: f32[1,128], index: 7, kind: output, shape index: {}]  }
   0x1   :  { %v12_v0 = vstv %s1704_s6 }
   0x2   :  { %13 = vst [vmem:[#allocation2] sm:$0x1] %v12_v0 }
   0x3   :  { %v148_v1 = vld [vmem:[%s1700_s2] sm:$0xff]  ;;  %v1284_v3 = vmov 0   ;;  %v149_v4 = vld [vmem:[%s1700_s2 + $0x8] sm:$0xff]  ;;  %v33_v6 = vld [vmem:[%s1699_s1 + $0x18] sm:$0xff] }
   0x4   :  { %v30_v2 = vld [vmem:[%s1699_s1] sm:$0xff]  ;;  %1259 = vset.pattern.permute.xlu1 %v1284_v3  ;;  %1258 = vset.pattern.permute.xlu0 %v1284_v3  ;;  %v31_v5 = vld [vmem:[%s1699_s1 + $0x8] sm:$0xff]  ;;  %v32_v7 = vld [vmem:[%s1699_s1 + $0x10] sm:$0xff] }
   0x5   :  { %166 = vperm.xlu1 %1259, %v148_v1   ;;  %48 = vperm.xlu0 %1258, %v30_v2   ;;  %v151_v8 = vld [vmem:[%s1700_s2 + $0x18] sm:$0xff]  ;;  %v150_v9 = vld [vmem:[%s1700_s2 + $0x10] sm:$0xff]  ;;  %v35_v10 = vld [vmem:[%s1699_s1 + $0x28] sm:$0xff] }
   0x6   :  { %v34_v11 = vld [vmem:[%s1699_s1 + $0x20] sm:$0xff]  ;;  %v153_v12 = vld [vmem:[%s1700_s2 + $0x28] sm:$0xff]  ;;  %v37_v14 = vld [vmem:[%s1699_s1 + $0x38] sm:$0xff] }
   0x7   :  { %v152_v13 = vld [vmem:[%s1700_s2 + $0x20] sm:$0xff]  ;;  %v36_v15 = vld [vmem:[%s1699_s1 + $0x30] sm:$0xff] }
   0x9   :  { %171 = vperm.xlu1 %1259, %v149_v4   ;;  %53 = vperm.xlu0 %1258, %v31_v5  }
   0xd   :  { %63 = vperm.xlu1 %1259, %v33_v6   ;;  %58 = vperm.xlu0 %1258, %v32_v7  }
  0x11   :  { %181 = vperm.xlu1 %1259, %v151_v8   ;;  %176 = vperm.xlu0 %1258, %v150_v9  }
  0x15   :  { %73 = vperm.xlu1 %1259, %v35_v10   ;;  %68 = vperm.xlu0 %1258, %v34_v11  }
  0x19   :  { %191 = vperm.xlu1 %1259, %v153_v12   ;;  %186 = vperm.xlu0 %1258, %v152_v13  }
  0x1a   :  { %14 = vsyncpa [#allocation4], 0  ;;  %v155_v16 = vld [vmem:[%s1700_s2 + $0x38] sm:$0xff]  ;;  %v154_v17 = vld [vmem:[%s1700_s2 + $0x30] sm:$0xff] }
  0x1b   :  { %v39_v18 = vld [vmem:[%s1699_s1 + $0x48] sm:$0xff]  ;;  %v38_v19 = vld [vmem:[%s1699_s1 + $0x40] sm:$0xff]  ;;  %v41_v22 = vld [vmem:[%s1699_s1 + $0x58] sm:$0xff] }
  0x1c   :  { %v157_v20 = vld [vmem:[%s1700_s2 + $0x48] sm:$0xff]  ;;  %v156_v21 = vld [vmem:[%s1700_s2 + $0x40] sm:$0xff]  ;;  %v40_v23 = vld [vmem:[%s1699_s1 + $0x50] sm:$0xff] }
  0x1d   :  { %83 = vperm.xlu1 %1259, %v37_v14   ;;  %78 = vperm.xlu0 %1258, %v36_v15   ;;  %v159_v24 = vld [vmem:[%s1700_s2 + $0x58] sm:$0xff]  ;;  %v158_v25 = vld [vmem:[%s1700_s2 + $0x50] sm:$0xff]  ;;  %v43_v26 = vld [vmem:[%s1699_s1 + $0x68] sm:$0xff] }
  0x1e   :  { %v42_v27 = vld [vmem:[%s1699_s1 + $0x60] sm:$0xff]  ;;  %v161_v28 = vld [vmem:[%s1700_s2 + $0x68] sm:$0xff]  ;;  %v45_v30 = vld [vmem:[%s1699_s1 + $0x78] sm:$0xff] }
  0x1f   :  { %v160_v29 = vld [vmem:[%s1700_s2 + $0x60] sm:$0xff]  ;;  %v44_v31 = vld [vmem:[%s1699_s1 + $0x70] sm:$0xff]  ;;  %v163_v32 = vld [vmem:[%s1700_s2 + $0x78] sm:$0xff] }
  0x20   :  { %v162_v33 = vld [vmem:[%s1700_s2 + $0x70] sm:$0xff]  ;;  %v293_v34 = vld [vmem:[%s1702_s4 + $0x8] sm:$0xff]  ;;  %v292_v35 = vld [vmem:[%s1702_s4] sm:$0xff] }
  0x21   :  { %201 = vperm.xlu1 %1259, %v155_v16   ;;  %196 = vperm.xlu0 %1258, %v154_v17   ;;  %v295_v36 = vld [vmem:[%s1702_s4 + $0x18] sm:$0xff]  ;;  %v294_v37 = vld [vmem:[%s1702_s4 + $0x10] sm:$0xff]  ;;  %v276_v38 = vld [vmem:[%s1701_s3] sm:$0xff] }
  0x22   :  { %v297_v39 = vld [vmem:[%s1702_s4 + $0x28] sm:$0xff]  ;;  %v296_v40 = vld [vmem:[%s1702_s4 + $0x20] sm:$0xff]  ;;  %1112 = vmatprep.mubr.f32.mxu0 %v276_v38  ;;  %v299_v41 = vld [vmem:[%s1702_s4 + $0x38] sm:$0xff] }
  0x23   :  { %v298_v42 = vld [vmem:[%s1702_s4 + $0x30] sm:$0xff]  ;;  %v301_v43 = vld [vmem:[%s1702_s4 + $0x48] sm:$0xff]  ;;  %v300_v44 = vld [vmem:[%s1702_s4 + $0x40] sm:$0xff] }
  0x24   :  { %v303_v45 = vld [vmem:[%s1702_s4 + $0x58] sm:$0xff]  ;;  %v302_v46 = vld [vmem:[%s1702_s4 + $0x50] sm:$0xff]  ;;  %v305_v47 = vld [vmem:[%s1702_s4 + $0x68] sm:$0xff] }
  0x25   :  { %93 = vperm.xlu1 %1259, %v39_v18   ;;  %88 = vperm.xlu0 %1258, %v38_v19   ;;  %v304_v48 = vld [vmem:[%s1702_s4 + $0x60] sm:$0xff]  ;;  %v307_v49 = vld [vmem:[%s1702_s4 + $0x78] sm:$0xff]  ;;  %v306_v50 = vld [vmem:[%s1702_s4 + $0x70] sm:$0xff] }
  0x26   :  { %v1001_v51 = vld [vmem:[%s1702_s4 + $0x88] sm:$0xff]  ;;  %v1000_v52 = vld [vmem:[%s1702_s4 + $0x80] sm:$0xff]  ;;  %v1003_v53 = vld [vmem:[%s1702_s4 + $0x98] sm:$0xff] }
  0x27   :  { %v1002_v54 = vld [vmem:[%s1702_s4 + $0x90] sm:$0xff]  ;;  %v824_v55 = vld [vmem:[%s1703_s5] sm:$0xff]  ;;  %v825_v58 = vld [vmem:[%s1703_s5 + $0x8] sm:$0xff] }
  0x28   :  { %v1004_v56 = vld [vmem:[%s1702_s4 + $0xa0] sm:$0xff]  ;;  %v826_v57 = vld [vmem:[%s1703_s5 + $0x10] sm:$0xff]  ;;  %v827_v59 = vld [vmem:[%s1703_s5 + $0x18] sm:$0xff] }
  0x29   :  { %211 = vperm.xlu1 %1259, %v157_v20   ;;  %206 = vperm.xlu0 %1258, %v156_v21   ;;  %v1005_v60 = vld [vmem:[%s1702_s4 + $0xa8] sm:$0xff]  ;;  %v828_v61 = vld [vmem:[%s1703_s5 + $0x20] sm:$0xff]  ;;  %v1006_v62 = vld [vmem:[%s1702_s4 + $0xb0] sm:$0xff] }
  0x2a   :  { %v829_v63 = vld [vmem:[%s1703_s5 + $0x28] sm:$0xff]  ;;  %v1007_v0 = vld [vmem:[%s1702_s4 + $0xb8] sm:$0xff]  ;;  %v830_v1 = vld [vmem:[%s1703_s5 + $0x30] sm:$0xff] }
  0x2b   :  { %v1008_v2 = vld [vmem:[%s1702_s4 + $0xc0] sm:$0xff]  ;;  %v831_v4 = vld [vmem:[%s1703_s5 + $0x38] sm:$0xff]  ;;  %v1009_v5 = vld [vmem:[%s1702_s4 + $0xc8] sm:$0xff] }
  0x2c   :  { %v1527_v3 = vld [vmem:[%s1698_s0] ss:$0 sm:$0xff]  ;;  %v1010_v10 = vld [vmem:[%s1702_s4 + $0xd0] sm:$0xff]  ;;  %v833_v15 = vld [vmem:[%s1703_s5 + $0x48] sm:$0xff] }
  0x2d   :  { %103 = vperm.xlu1 %1259, %v41_v22   ;;  %98 = vperm.xlu0 %1258, %v40_v23   ;;  %v832_v9 = vld [vmem:[%s1703_s5 + $0x40] sm:$0xff]  ;;  %v1011_v16 = vld [vmem:[%s1702_s4 + $0xd8] sm:$0xff]  ;;  %v834_v22 = vld [vmem:[%s1703_s5 + $0x50] sm:$0xff] }
  0x2e   :  { %v1012_v23 = vld [vmem:[%s1702_s4 + $0xe0] sm:$0xff] }
  0x2f   :  { %v836_v38 = vld [vmem:[%s1703_s5 + $0x60] sm:$0xff] }
  0x31   :  { %221 = vperm.xlu1 %1259, %v159_v24   ;;  %216 = vperm.xlu0 %1258, %v158_v25  }
  0x35   :  { %113 = vperm.xlu1 %1259, %v43_v26   ;;  %108 = vperm.xlu0 %1258, %v42_v27  }
  0x39   :  { %231 = vperm.xlu1 %1259, %v161_v28   ;;  %226 = vperm.xlu0 %1258, %v160_v29  }
  0x3d   :  { %123 = vperm.xlu1 %1259, %v45_v30   ;;  %118 = vperm.xlu0 %1258, %v44_v31   ;;  %v835_v31 = vld [vmem:[%s1703_s5 + $0x58] sm:$0xff] }
  0x41   :  { %241 = vperm.xlu1 %1259, %v163_v32   ;;  %236 = vperm.xlu0 %1258, %v162_v33   ;;  %v1013_v32 = vld [vmem:[%s1702_s4 + $0xe8] sm:$0xff] }
  0x45   :  { %315 = vperm.xlu1 %1259, %v293_v34   ;;  %310 = vperm.xlu0 %1258, %v292_v35  }
  0x49   :  { %325 = vperm.xlu1 %1259, %v295_v36   ;;  %320 = vperm.xlu0 %1258, %v294_v37  }
  0x4d   :  { %335 = vperm.xlu1 %1259, %v297_v39   ;;  %330 = vperm.xlu0 %1258, %v296_v40   ;;  %v1014_v39 = vld [vmem:[%s1702_s4 + $0xf0] sm:$0xff] }
  0x51   :  { %345 = vperm.xlu1 %1259, %v299_v41   ;;  %340 = vperm.xlu0 %1258, %v298_v42  }
  0x55   :  { %355 = vperm.xlu1 %1259, %v301_v43   ;;  %350 = vperm.xlu0 %1258, %v300_v44  }
  0x59   :  { %365 = vperm.xlu1 %1259, %v303_v45   ;;  %360 = vperm.xlu0 %1258, %v302_v46   ;;  %v837_v46 = vld [vmem:[%s1703_s5 + $0x68] sm:$0xff] }
  0x5d   :  { %375 = vperm.xlu1 %1259, %v305_v47   ;;  %370 = vperm.xlu0 %1258, %v304_v48   ;;  %v1015_v47 = vld [vmem:[%s1702_s4 + $0xf8] sm:$0xff] }
  0x61   :  { %385 = vperm.xlu1 %1259, %v307_v49   ;;  %380 = vperm.xlu0 %1258, %v306_v50  }
  0x65   :  { %590 = vperm.xlu1 %1259, %v1001_v51   ;;  %585 = vperm.xlu0 %1258, %v1000_v52  }
  0x69   :  { %600 = vperm.xlu1 %1259, %v1003_v53   ;;  %595 = vperm.xlu0 %1258, %v1002_v54   ;;  %v839_v53 = vld [vmem:[%s1703_s5 + $0x78] sm:$0xff]  ;;  %v838_v54 = vld [vmem:[%s1703_s5 + $0x70] sm:$0xff] }
  0x6d   :  { %842 = vperm.xlu1 %1259, %v824_v55   ;;  %605 = vperm.xlu0 %1258, %v1004_v56  }
  0x71   :  { %852 = vperm.xlu1 %1259, %v826_v57   ;;  %847 = vperm.xlu0 %1258, %v825_v58  }
  0x75   :  { %857 = vperm.xlu1 %1259, %v827_v59   ;;  %610 = vperm.xlu0 %1258, %v1005_v60  }
  0x79   :  { %862 = vperm.xlu1 %1259, %v828_v61   ;;  %615 = vperm.xlu0 %1258, %v1006_v62   ;;  %v957_v61 = vld [vmem:[#allocation2] sm:$0x1] }
  0x7d   :  { %867 = vperm.xlu1 %1259, %v829_v63   ;;  %620 = vperm.xlu0 %1258, %v1007_v0  }
  0x81   :  { %872 = vperm.xlu1 %1259, %v830_v1   ;;  %625 = vperm.xlu0 %1258, %v1008_v2  }
  0x84   :  { %v167_v6 = vpop.permute.xlu1 %166  ;;  %v49_v7 = vpop.permute.xlu0 %48 }
  0x85   :  { %v132_v8 = vmul.f32 %v1527_v3, %v49_v7  ;;  %877 = vperm.xlu1 %1259, %v831_v4   ;;  %630 = vperm.xlu0 %1258, %v1009_v5  }
  0x87   :  { %v244_v13 = vadd.f32 %v167_v6, %v132_v8 }
  0x88   :  { %v172_v11 = vpop.permute.xlu1 %171  ;;  %v54_v12 = vpop.permute.xlu0 %53 }
  0x89   :  { %v133_v14 = vmul.f32 %v1527_v3, %v54_v12  ;;  %882 = vperm.xlu1 %1259, %v832_v9   ;;  %635 = vperm.xlu0 %1258, %v1010_v10   ;;  %v260_v20 = vmax.f32 %v244_v13, 0.0 }
  0x8b   :  { %v245_v17 = vadd.f32 %v172_v11, %v133_v14 }
  0x8c   :  { %v64_v18 = vpop.permute.xlu1 %63  ;;  %v59_v19 = vpop.permute.xlu0 %58 }
  0x8d   :  { %v261_v21 = vmax.f32 %v245_v17, 0.0  ;;  %887 = vperm.xlu1 %1259, %v833_v15   ;;  %640 = vperm.xlu0 %1258, %v1011_v16   ;;  %v135_v24 = vmul.f32 %v1527_v3, %v64_v18  ;;  %v134_v25 = vmul.f32 %v1527_v3, %v59_v19 }
  0x8f   :  { %v1192_v26 = vpack.c.bf16 %v261_v21, %v260_v20 }
  0x90   :  { %v182_v27 = vpop.permute.xlu1 %181  ;;  %v177_v28 = vpop.permute.xlu0 %176 }
  0x91   :  { %v247_v29 = vadd.f32 %v182_v27, %v135_v24  ;;  %v246_v30 = vadd.f32 %v177_v28, %v134_v25  ;;  %892 = vperm.xlu1 %1259, %v834_v22   ;;  %645 = vperm.xlu0 %1258, %v1012_v23  }
  0x92   :  { %1193 = vmatprep.subr.bf16.mxu0 %v1192_v26 }
  0x93   :  { %v263_v33 = vmax.f32 %v247_v29, 0.0  ;;  %v262_v34 = vmax.f32 %v246_v30, 0.0  ;;  %1195 = vmatpush3.bf16.msra.mxu0 %v1192_v26 }
  0x94   :  { %v74_v35 = vpop.permute.xlu1 %73  ;;  %v69_v36 = vpop.permute.xlu0 %68 }
  0x95   :  { %v1196_v37 = vpack.c.bf16 %v263_v33, %v262_v34  ;;  %897 = vperm.xlu1 %1259, %v835_v31   ;;  %650 = vperm.xlu0 %1258, %v1013_v32   ;;  %v137_v40 = vmul.f32 %v1527_v3, %v74_v35  ;;  %v136_v41 = vmul.f32 %v1527_v3, %v69_v36 }
  0x97   :  { %1197 = vmatprep.subr.bf16.mxu0 %v1196_v37 }
  0x98   :  { %v192_v42 = vpop.permute.xlu1 %191  ;;  %v187_v43 = vpop.permute.xlu0 %186  ;;  %1199 = vmatpush3.bf16.msra.mxu0 %v1196_v37 }
  0x99   :  { %v249_v44 = vadd.f32 %v192_v42, %v137_v40  ;;  %v248_v45 = vadd.f32 %v187_v43, %v136_v41  ;;  %902 = vperm.xlu1 %1259, %v836_v38   ;;  %655 = vperm.xlu0 %1258, %v1014_v39  }
  0x9b   :  { %v265_v48 = vmax.f32 %v249_v44, 0.0  ;;  %v264_v49 = vmax.f32 %v248_v45, 0.0 }
  0x9c   :  { %v84_v50 = vpop.permute.xlu1 %83  ;;  %v79_v51 = vpop.permute.xlu0 %78 }
  0x9d   :  { %v1200_v52 = vpack.c.bf16 %v265_v48, %v264_v49  ;;  %907 = vperm.xlu1 %1259, %v837_v46   ;;  %660 = vperm.xlu0 %1258, %v1015_v47   ;;  %v139_v55 = vmul.f32 %v1527_v3, %v84_v50  ;;  %v138_v56 = vmul.f32 %v1527_v3, %v79_v51  ;;  %v277_v46 = vld [vmem:[%s1701_s3 + $0x8] sm:$0xff]  ;;  %v278_v47 = vld [vmem:[%s1701_s3 + $0x10] sm:$0xff]  ;;  %v280_v48 = vld [vmem:[%s1701_s3 + $0x20] sm:$0xff] }
  0x9e   :  { %v281_v49 = vld [vmem:[%s1701_s3 + $0x28] sm:$0xff]  ;;  %v282_v50 = vld [vmem:[%s1701_s3 + $0x30] sm:$0xff]  ;;  %v283_v51 = vld [vmem:[%s1701_s3 + $0x38] sm:$0xff] }
  0x9f   :  { %1201 = vmatprep.subr.bf16.mxu0 %v1200_v52 }
  0xa0   :  { %v202_v57 = vpop.permute.xlu1 %201  ;;  %v197_v58 = vpop.permute.xlu0 %196  ;;  %1203 = vmatpush3.bf16.msra.mxu0 %v1200_v52  ;;  %v284_v52 = vld [vmem:[%s1701_s3 + $0x40] sm:$0xff] }
  0xa1   :  { %v251_v59 = vadd.f32 %v202_v57, %v139_v55  ;;  %v250_v60 = vadd.f32 %v197_v58, %v138_v56  ;;  %917 = vperm.xlu1 %1259, %v839_v53   ;;  %912 = vperm.xlu0 %1258, %v838_v54   ;;  %v285_v53 = vld [vmem:[%s1701_s3 + $0x48] sm:$0xff]  ;;  %v286_v54 = vld [vmem:[%s1701_s3 + $0x50] sm:$0xff]  ;;  %v287_v55 = vld [vmem:[%s1701_s3 + $0x58] sm:$0xff] }
  0xa2   :  { %v288_v56 = vld [vmem:[%s1701_s3 + $0x60] sm:$0xff]  ;;  %v289_v57 = vld [vmem:[%s1701_s3 + $0x68] sm:$0xff]  ;;  %v290_v58 = vld [vmem:[%s1701_s3 + $0x70] sm:$0xff] }
  0xa3   :  { %v267_v62 = vmax.f32 %v251_v59, 0.0  ;;  %v266_v63 = vmax.f32 %v250_v60, 0.0  ;;  %v291_v59 = vld [vmem:[%s1701_s3 + $0x78] sm:$0xff]  ;;  %v984_v60 = vld [vmem:[%s1701_s3 + $0x80] sm:$0xff] }
  0xa4   :  { %v94_v0 = vpop.permute.xlu1 %93  ;;  %v89_v1 = vpop.permute.xlu0 %88  ;;  %1168 = vmatprep.mubr.f32.mxu1 %v984_v60 }
  0xa5   :  { %v1204_v2 = vpack.c.bf16 %v267_v62, %v266_v63  ;;  %960 = vperm.xlu0 %1258, %v957_v61   ;;  %v141_v4 = vmul.f32 %v1527_v3, %v94_v0  ;;  %v140_v5 = vmul.f32 %v1527_v3, %v89_v1 }
  0xa7   :  { %1205 = vmatprep.subr.bf16.mxu0 %v1204_v2 }
  0xa8   :  { %v212_v6 = vpop.permute.xlu1 %211  ;;  %v207_v7 = vpop.permute.xlu0 %206  ;;  %1207 = vmatpush3.bf16.msra.mxu0 %v1204_v2 }
  0xa9   :  { %v253_v8 = vadd.f32 %v212_v6, %v141_v4  ;;  %v252_v9 = vadd.f32 %v207_v7, %v140_v5 }
  0xab   :  { %v269_v10 = vmax.f32 %v253_v8, 0.0  ;;  %v268_v11 = vmax.f32 %v252_v9, 0.0 }
  0xac   :  { %v104_v12 = vpop.permute.xlu1 %103  ;;  %v99_v13 = vpop.permute.xlu0 %98 }
  0xad   :  { %v1208_v14 = vpack.c.bf16 %v269_v10, %v268_v11  ;;  %v143_v15 = vmul.f32 %v1527_v3, %v104_v12  ;;  %v142_v16 = vmul.f32 %v1527_v3, %v99_v13 }
  0xaf   :  { %1209 = vmatprep.subr.bf16.mxu0 %v1208_v14 }
  0xb0   :  { %v222_v17 = vpop.permute.xlu1 %221  ;;  %v217_v18 = vpop.permute.xlu0 %216  ;;  %1211 = vmatpush3.bf16.msra.mxu0 %v1208_v14 }
  0xb1   :  { %v255_v19 = vadd.f32 %v222_v17, %v143_v15  ;;  %v254_v20 = vadd.f32 %v217_v18, %v142_v16 }
  0xb3   :  { %v271_v21 = vmax.f32 %v255_v19, 0.0  ;;  %v270_v22 = vmax.f32 %v254_v20, 0.0 }
  0xb4   :  { %v114_v23 = vpop.permute.xlu1 %113  ;;  %v109_v24 = vpop.permute.xlu0 %108 }
  0xb5   :  { %v1212_v25 = vpack.c.bf16 %v271_v21, %v270_v22  ;;  %v145_v26 = vmul.f32 %v1527_v3, %v114_v23  ;;  %v144_v27 = vmul.f32 %v1527_v3, %v109_v24 }
  0xb7   :  { %1213 = vmatprep.subr.bf16.mxu0 %v1212_v25 }
  0xb8   :  { %v232_v28 = vpop.permute.xlu1 %231  ;;  %v227_v29 = vpop.permute.xlu0 %226  ;;  %1215 = vmatpush3.bf16.msra.mxu0 %v1212_v25 }
  0xb9   :  { %v257_v30 = vadd.f32 %v232_v28, %v145_v26  ;;  %v256_v31 = vadd.f32 %v227_v29, %v144_v27 }
  0xbb   :  { %v273_v32 = vmax.f32 %v257_v30, 0.0  ;;  %v272_v33 = vmax.f32 %v256_v31, 0.0 }
  0xbc   :  { %v124_v34 = vpop.permute.xlu1 %123  ;;  %v119_v35 = vpop.permute.xlu0 %118 }
  0xbd   :  { %v1216_v36 = vpack.c.bf16 %v273_v32, %v272_v33  ;;  %v147_v37 = vmul.f32 %v1527_v3, %v124_v34  ;;  %v146_v38 = vmul.f32 %v1527_v3, %v119_v35  ;;  %v279_v3 = vld [vmem:[%s1701_s3 + $0x18] sm:$0xff] }
  0xbf   :  { %1217 = vmatprep.subr.bf16.mxu0 %v1216_v36 }
  0xc0   :  { %v242_v39 = vpop.permute.xlu1 %241  ;;  %v237_v40 = vpop.permute.xlu0 %236  ;;  %1219 = vmatpush3.bf16.msra.mxu0 %v1216_v36 }
  0xc1   :  { %v259_v41 = vadd.f32 %v242_v39, %v147_v37  ;;  %v258_v42 = vadd.f32 %v237_v40, %v146_v38 }
  0xc3   :  { %v275_v43 = vmax.f32 %v259_v41, 0.0  ;;  %v274_v44 = vmax.f32 %v258_v42, 0.0 }
  0xc4   :  { %v316_v61 = vpop.permute.xlu1 %315  ;;  %v311_v62 = vpop.permute.xlu0 %310 }
  0xc5   :  { %v1220_v45 = vpack.c.bf16 %v275_v43, %v274_v44 }
  0xc7   :  { %1221 = vmatprep.subr.bf16.mxu0 %v1220_v45 }
  0xc8   :  { %1223 = vmatpush3.bf16.msra.mxu0 %v1220_v45  ;;  %v326_v63 = vpop.permute.xlu1 %325  ;;  %v321_v0 = vpop.permute.xlu0 %320 }
  0xcb   :  { %1113 = vmatmul.mubr.f32.vlgmr.msra.gmra.mrb[0].mxu0 %v277_v46 }
  0xcc   :  { %1115 = vmatprep.mubr.f32.mxu0 %v278_v47  ;;  %v336_v1 = vpop.permute.xlu1 %335  ;;  %v331_v2 = vpop.permute.xlu0 %330 }
  0xcf   :  { %1116 = vmatmul.mubr.f32.gmra.mrb[2].mxu0 %v279_v3 }
  0xd0   :  { %1118 = vmatprep.mubr.f32.mxu0 %v280_v48  ;;  %v346_v9 = vpop.permute.xlu1 %345  ;;  %v341_v12 = vpop.permute.xlu0 %340 }
  0xd3   :  { %1119 = vmatmul.mubr.f32.gmra.mrb[4].mxu0 %v281_v49 }
  0xd4   :  { %1121 = vmatprep.mubr.f32.mxu0 %v282_v50  ;;  %v356_v22 = vpop.permute.xlu1 %355  ;;  %v351_v25 = vpop.permute.xlu0 %350 }
  0xd7   :  { %1122 = vmatmul.mubr.f32.gmra.mrb[6].mxu0 %v283_v51 }
  0xd8   :  { %1124 = vmatprep.mubr.f32.mxu0 %v284_v52  ;;  %v366_v34 = vpop.permute.xlu1 %365  ;;  %v361_v37 = vpop.permute.xlu0 %360 }
  0xdb   :  { %1125 = vmatmul.mubr.f32.gmra.mrb[8].mxu0 %v285_v53 }
  0xdc   :  { %1127 = vmatprep.mubr.f32.mxu0 %v286_v54  ;;  %v376_v47 = vpop.permute.xlu1 %375  ;;  %v371_v49 = vpop.permute.xlu0 %370 }
  0xdf   :  { %1128 = vmatmul.mubr.f32.gmra.mrb[10].mxu0 %v287_v55 }
  0xe0   :  { %1130 = vmatprep.mubr.f32.mxu0 %v288_v56 }
  0xe3   :  { %1131 = vmatmul.mubr.f32.gmra.mrb[12].mxu0 %v289_v57 }
  0xe4   :  { %1133 = vmatprep.mubr.f32.mxu0 %v290_v58  ;;  %v386_v58 = vpop.permute.xlu1 %385 }
  0xe7   :  { %1134 = vmatmul.mubr.f32.gmra.mrb[14].mxu0 %v291_v59 }
 0x19e   :  { %v1114_v4 = vpop.f32.mrb[0].mxu0 }
 0x19f   :  { %v460_v5 = vadd.f32 %v1114_v4, %v316_v61  ;;  %v454_v6 = vpop.f32.mrb[1].mxu0  ;;  %v381_v61 = vpop.permute.xlu0 %380 }
 0x1a0   :  { %v455_v7 = vadd.f32 %v454_v6, %v311_v62  ;;  %v985_v6 = vld [vmem:[%s1701_s3 + $0x88] sm:$0xff] }
 0x1a1   :  { %v534_v8 = vmax.f32 %v460_v5, 0.0 }
 0x1a2   :  { %v533_v10 = vmax.f32 %v455_v7, 0.0  ;;  %v1117_v11 = vpop.f32.mrb[2].mxu0  ;;  %v986_v7 = vld [vmem:[%s1701_s3 + $0x90] sm:$0xff] }
 0x1a3   :  { %v470_v13 = vadd.f32 %v1117_v11, %v326_v63  ;;  %v464_v14 = vpop.f32.mrb[3].mxu0  ;;  %v990_v11 = vld [vmem:[%s1701_s3 + $0xb0] sm:$0xff] }
 0x1a4   :  { %v465_v15 = vadd.f32 %v464_v14, %v321_v0  ;;  %v1224_v16 = vpack.c.bf16 %v534_v8, %v533_v10  ;;  %v987_v8 = vld [vmem:[%s1701_s3 + $0x98] sm:$0xff]  ;;  %v989_v10 = vld [vmem:[%s1701_s3 + $0xa8] sm:$0xff] }
 0x1a5   :  { %v536_v17 = vmax.f32 %v470_v13, 0.0  ;;  %v992_v13 = vld [vmem:[%s1701_s3 + $0xc0] sm:$0xff]  ;;  %v993_v14 = vld [vmem:[%s1701_s3 + $0xc8] sm:$0xff] }
 0x1a6   :  { %v535_v18 = vmax.f32 %v465_v15, 0.0  ;;  %v1120_v19 = vpop.f32.mrb[4].mxu0  ;;  %1225 = vmatprep.subr.bf16.mxu1 %v1224_v16  ;;  %v994_v15 = vld [vmem:[%s1701_s3 + $0xd0] sm:$0xff] }
 0x1a7   :  { %v480_v20 = vadd.f32 %v1120_v19, %v336_v1  ;;  %v474_v21 = vpop.f32.mrb[5].mxu0  ;;  %1227 = vmatpush3.bf16.msra.mxu1 %v1224_v16  ;;  %v995_v16 = vld [vmem:[%s1701_s3 + $0xd8] sm:$0xff]  ;;  %v998_v19 = vld [vmem:[%s1701_s3 + $0xf0] sm:$0xff] }
 0x1a8   :  { %v1228_v23 = vpack.c.bf16 %v536_v17, %v535_v18  ;;  %v475_v24 = vadd.f32 %v474_v21, %v331_v2  ;;  %v996_v17 = vld [vmem:[%s1701_s3 + $0xe0] sm:$0xff]  ;;  %v997_v18 = vld [vmem:[%s1701_s3 + $0xe8] sm:$0xff]  ;;  %v586_v21 = vpop.permute.xlu0 %585 }
 0x1a9   :  { %v538_v26 = vmax.f32 %v480_v20, 0.0  ;;  %v999_v20 = vld [vmem:[%s1701_s3 + $0xf8] sm:$0xff] }
 0x1aa   :  { %v537_v27 = vmax.f32 %v475_v24, 0.0  ;;  %v1123_v28 = vpop.f32.mrb[6].mxu0  ;;  %1229 = vmatprep.subr.bf16.mxu1 %v1228_v23 }
 0x1ab   :  { %v490_v29 = vadd.f32 %v1123_v28, %v346_v9  ;;  %v484_v30 = vpop.f32.mrb[7].mxu0  ;;  %1231 = vmatpush3.bf16.msra.mxu1 %v1228_v23  ;;  %v988_v9 = vld [vmem:[%s1701_s3 + $0xa0] sm:$0xff] }
 0x1ac   :  { %v1232_v31 = vpack.c.bf16 %v538_v26, %v537_v27  ;;  %v485_v32 = vadd.f32 %v484_v30, %v341_v12  ;;  %v991_v12 = vld [vmem:[%s1701_s3 + $0xb8] sm:$0xff]  ;;  %v596_v23 = vpop.permute.xlu0 %595  ;;  %s1285_s3 = smov [#allocation3]  }
 0x1ad   :  { %v540_v33 = vmax.f32 %v490_v29, 0.0  ;;  %s975_s14 = sshll.u32 %s1285_s3, 4  ;;  %s976_s14 = int_to_ptr.vmem [resolvable:$true] %s975_s14 }
 0x1ae   :  { %v539_v35 = vmax.f32 %v485_v32, 0.0  ;;  %v1126_v36 = vpop.f32.mrb[8].mxu0  ;;  %1233 = vmatprep.subr.bf16.mxu1 %v1232_v31  ;;  %s1260_s15 = scalar_lea.vmem %s976_s14, 16  ;;  %s1264_s16 = scalar_lea.vmem %s976_s14, 32 }
 0x1af   :  { %v500_v38 = vadd.f32 %v1126_v36, %v356_v22  ;;  %v494_v39 = vpop.f32.mrb[9].mxu0  ;;  %1235 = vmatpush3.bf16.msra.mxu1 %v1232_v31  ;;  %v591_v22 = vpop.permute.xlu1 %590  ;;  %p1261_p0 = scmp.ne.s32.totalorder %s976_s14, %s1260_s15  ;;  %p1265_p1 = scmp.lt.s32.totalorder %s976_s14, %s976_s14 }
 0x1b0   :  { %v1236_v40 = vpack.c.bf16 %v540_v33, %v539_v35  ;;  %v495_v41 = vadd.f32 %v494_v39, %v351_v25  ;;  %v606_v25 = vpop.permute.xlu0 %605  ;;  %p1266_p2 = scmp.lt.s32.totalorder %s1264_s16, %s1260_s15 }
 0x1b1   :  { %v542_v42 = vmax.f32 %v500_v38, 0.0 }
 0x1b2   :  { %v541_v43 = vmax.f32 %v495_v41, 0.0  ;;  %v1129_v44 = vpop.f32.mrb[10].mxu0  ;;  %1237 = vmatprep.subr.bf16.mxu1 %v1236_v40  ;;  %p1267_p3 = por %p1266_p2, %p1265_p1 }
 0x1b3   :  { %v510_v45 = vadd.f32 %v1129_v44, %v366_v34  ;;  %v504_v46 = vpop.f32.mrb[11].mxu0  ;;  %1239 = vmatpush3.bf16.msra.mxu1 %v1236_v40  ;;  %v601_v24 = vpop.permute.xlu1 %600 }
 0x1b4   :  { %v1240_v3 = vpack.c.bf16 %v542_v42, %v541_v43  ;;  %v505_v48 = vadd.f32 %v504_v46, %v361_v37  ;;  %v848_v27 = vpop.permute.xlu0 %847  ;;  %p1268_p4 = pnand %p1267_p3, %p1261_p0 }
 0x1b5   :  { %v544_v50 = vmax.f32 %v510_v45, 0.0 }
 0x1b6   :  { %v543_v51 = vmax.f32 %v505_v48, 0.0  ;;  %v1132_v52 = vpop.f32.mrb[12].mxu0  ;;  %1241 = vmatprep.subr.bf16.mxu1 %v1240_v3 }
 0x1b7   :  { %v520_v53 = vadd.f32 %v1132_v52, %v376_v47  ;;  %v514_v54 = vpop.f32.mrb[13].mxu0  ;;  %1243 = vmatpush3.bf16.msra.mxu1 %v1240_v3  ;;  %v843_v26 = vpop.permute.xlu1 %842 }
 0x1b8   :  { %v1244_v55 = vpack.c.bf16 %v544_v50, %v543_v51  ;;  %v515_v56 = vadd.f32 %v514_v54, %v371_v49  ;;  %v611_v29 = vpop.permute.xlu0 %610 }
 0x1b9   :  { %v546_v57 = vmax.f32 %v520_v53, 0.0 }
 0x1ba   :  { %v545_v59 = vmax.f32 %v515_v56, 0.0  ;;  %v1135_v60 = vpop.f32.mrb[14].mxu0  ;;  %1245 = vmatprep.subr.bf16.mxu1 %v1244_v55 }
 0x1bb   :  { %v530_v62 = vadd.f32 %v1135_v60, %v386_v58  ;;  %v524_v63 = vpop.f32.mrb[15].mxu0  ;;  %1247 = vmatpush3.bf16.msra.mxu1 %v1244_v55  ;;  %v853_v28 = vpop.permute.xlu1 %852 }
 0x1bc   :  { %v1248_v0 = vpack.c.bf16 %v546_v57, %v545_v59  ;;  %v525_v1 = vadd.f32 %v524_v63, %v381_v61  ;;  %v616_v31 = vpop.permute.xlu0 %615 }
 0x1bd   :  { %v548_v2 = vmax.f32 %v530_v62, 0.0 }
 0x1be   :  { %v547_v4 = vmax.f32 %v525_v1, 0.0  ;;  %1249 = vmatprep.subr.bf16.mxu1 %v1248_v0 }
 0x1bf   :  { %1251 = vmatpush3.bf16.msra.mxu1 %v1248_v0  ;;  %v858_v30 = vpop.permute.xlu1 %857 }
 0x1c0   :  { %v1252_v5 = vpack.c.bf16 %v548_v2, %v547_v4  ;;  %v621_v33 = vpop.permute.xlu0 %620 }
 0x1c2   :  { %1253 = vmatprep.subr.bf16.mxu1 %v1252_v5 }
 0x1c3   :  { %1255 = vmatpush3.bf16.msra.mxu1 %v1252_v5  ;;  %v863_v32 = vpop.permute.xlu1 %862 }
 0x1c4   :  { %v626_v35 = vpop.permute.xlu0 %625 }
 0x1c6   :  { %1169 = vmatmul.mubr.f32.vlgmr.msra.gmra.mrb[0].mxu1 %v985_v6 }
 0x1c7   :  { %1171 = vmatprep.mubr.f32.mxu1 %v986_v7  ;;  %v868_v34 = vpop.permute.xlu1 %867 }
 0x1c8   :  { %v631_v37 = vpop.permute.xlu0 %630 }
 0x1ca   :  { %1172 = vmatmul.mubr.f32.gmra.mrb[2].mxu1 %v987_v8 }
 0x1cb   :  { %1174 = vmatprep.mubr.f32.mxu1 %v988_v9  ;;  %v873_v36 = vpop.permute.xlu1 %872 }
 0x1cc   :  { %v636_v39 = vpop.permute.xlu0 %635 }
 0x1ce   :  { %1175 = vmatmul.mubr.f32.gmra.mrb[4].mxu1 %v989_v10 }
 0x1cf   :  { %1177 = vmatprep.mubr.f32.mxu1 %v990_v11  ;;  %v878_v38 = vpop.permute.xlu1 %877 }
 0x1d0   :  { %v641_v45 = vpop.permute.xlu0 %640 }
 0x1d2   :  { %1178 = vmatmul.mubr.f32.gmra.mrb[6].mxu1 %v991_v12 }
 0x1d3   :  { %1180 = vmatprep.mubr.f32.mxu1 %v992_v13  ;;  %v883_v40 = vpop.permute.xlu1 %882 }
 0x1d4   :  { %v646_v58 = vpop.permute.xlu0 %645 }
 0x1d6   :  { %1181 = vmatmul.mubr.f32.gmra.mrb[8].mxu1 %v993_v14 }
 0x1d7   :  { %1183 = vmatprep.mubr.f32.mxu1 %v994_v15  ;;  %v888_v48 = vpop.permute.xlu1 %887 }
 0x1d8   :  { %v651_v11 = vpop.permute.xlu0 %650 }
 0x1da   :  { %1184 = vmatmul.mubr.f32.gmra.mrb[10].mxu1 %v995_v16 }
 0x1db   :  { %1186 = vmatprep.mubr.f32.mxu1 %v996_v17  ;;  %v893_v63 = vpop.permute.xlu1 %892 }
 0x1de   :  { %1187 = vmatmul.mubr.f32.gmra.mrb[12].mxu1 %v997_v18 }
 0x1df   :  { %1189 = vmatprep.mubr.f32.mxu1 %v998_v19  ;;  %v898_v17 = vpop.permute.xlu1 %897 }
 0x1e2   :  { %1190 = vmatmul.mubr.f32.gmra.mrb[14].mxu1 %v999_v20 }
 0x299   :  { %v1170_v41 = vpop.f32.mrb[0].mxu1 }
 0x29a   :  { %v735_v42 = vadd.f32 %v1170_v41, %v591_v22  ;;  %v729_v43 = vpop.f32.mrb[1].mxu1 }
 0x29b   :  { %v730_v44 = vadd.f32 %v729_v43, %v586_v21 }
 0x29c   :  { %v809_v46 = vmax.f32 %v735_v42, 0.0 }
 0x29d   :  { %v808_v47 = vmax.f32 %v730_v44, 0.0  ;;  %v1173_v3 = vpop.f32.mrb[2].mxu1 }
 0x29e   :  { %v921_v49 = vmul.f32 %v848_v27, %v809_v46  ;;  %v745_v50 = vadd.f32 %v1173_v3, %v601_v24  ;;  %v739_v51 = vpop.f32.mrb[3].mxu1 }
 0x29f   :  { %v920_v52 = vmul.f32 %v843_v26, %v808_v47  ;;  %v740_v53 = vadd.f32 %v739_v51, %v596_v23 }
 0x2a0   :  { %v811_v55 = vmax.f32 %v745_v50, 0.0 }
 0x2a1   :  { %v936_v54 = vadd.f32 %v921_v49, %v920_v52  ;;  %v810_v56 = vmax.f32 %v740_v53, 0.0  ;;  %v1176_v57 = vpop.f32.mrb[4].mxu1 }
 0x2a2   :  { %v755_v59 = vadd.f32 %v1176_v57, %v611_v29  ;;  %v749_v60 = vpop.f32.mrb[5].mxu1  ;;  %v923_v0 = vmul.f32 %v858_v30, %v811_v55 }
 0x2a3   :  { %v922_v61 = vmul.f32 %v853_v28, %v810_v56  ;;  %v750_v62 = vadd.f32 %v749_v60, %v606_v25  ;;  %v656_v28 = vpop.permute.xlu0 %655 }
 0x2a4   :  { %v813_v2 = vmax.f32 %v755_v59, 0.0 }
 0x2a5   :  { %v937_v1 = vadd.f32 %v936_v54, %v922_v61  ;;  %v812_v4 = vmax.f32 %v750_v62, 0.0  ;;  %v1179_v5 = vpop.f32.mrb[6].mxu1 }
 0x2a6   :  { %v765_v6 = vadd.f32 %v1179_v5, %v621_v33  ;;  %v759_v7 = vpop.f32.mrb[7].mxu1  ;;  %v925_v12 = vmul.f32 %v868_v34, %v813_v2  ;;  %v903_v34 = vpop.permute.xlu1 %902  ;;  %v963_v2 = vlaneseq }
 0x2a7   :  { %v924_v8 = vmul.f32 %v863_v32, %v812_v4  ;;  %v938_v9 = vadd.f32 %v937_v1, %v923_v0  ;;  %v760_v10 = vadd.f32 %v759_v7, %v616_v31  ;;  %v661_v3 = vpop.permute.xlu0 %660 }
 0x2a8   :  { %v815_v14 = vmax.f32 %v765_v6, 0.0  ;;  %v964_v6 = vshrl.u32 %v963_v2, 7 }
 0x2a9   :  { %v939_v13 = vadd.f32 %v938_v9, %v924_v8  ;;  %v814_v15 = vmax.f32 %v760_v10, 0.0  ;;  %v1182_v16 = vpop.f32.mrb[8].mxu1 }
 0x2aa   :  { %v775_v18 = vadd.f32 %v1182_v16, %v631_v37  ;;  %v769_v19 = vpop.f32.mrb[9].mxu1  ;;  %v927_v23 = vmul.f32 %v878_v38, %v815_v14  ;;  %v965_v9 = vsub.s32 0, %v964_v6 }
 0x2ab   :  { %v926_v20 = vmul.f32 %v873_v36, %v814_v15  ;;  %v940_v21 = vadd.f32 %v939_v13, %v925_v12  ;;  %v770_v22 = vadd.f32 %v769_v19, %v626_v35  ;;  %v913_v61 = vpop.permute.xlu0 %912 }
 0x2ac   :  { %v817_v25 = vmax.f32 %v775_v18, 0.0 }
 0x2ad   :  { %v941_v24 = vadd.f32 %v940_v21, %v926_v20  ;;  %v816_v26 = vmax.f32 %v770_v22, 0.0  ;;  %v1185_v27 = vpop.f32.mrb[10].mxu1 }
 0x2ae   :  { %v785_v29 = vadd.f32 %v1185_v27, %v641_v45  ;;  %v779_v30 = vpop.f32.mrb[11].mxu1  ;;  %v929_v41 = vmul.f32 %v888_v48, %v817_v25 }
 0x2af   :  { %v928_v31 = vmul.f32 %v883_v40, %v816_v26  ;;  %v942_v32 = vadd.f32 %v941_v24, %v927_v23  ;;  %v780_v33 = vadd.f32 %v779_v30, %v636_v39  ;;  %v908_v40 = vpop.permute.xlu1 %907 }
 0x2b0   :  { %v819_v43 = vmax.f32 %v785_v29, 0.0 }
 0x2b1   :  { %v943_v42 = vadd.f32 %v942_v32, %v928_v31  ;;  %v818_v37 = vmax.f32 %v780_v33, 0.0  ;;  %v1188_v44 = vpop.f32.mrb[12].mxu1 }
 0x2b2   :  { %v795_v36 = vadd.f32 %v1188_v44, %v651_v11  ;;  %v789_v46 = vpop.f32.mrb[13].mxu1  ;;  %v931_v49 = vmul.f32 %v898_v17, %v819_v43  ;;  %v961_v11 = vpop.permute.xlu0 %960 }
 0x2b3   :  { %v930_v35 = vmul.f32 %v893_v63, %v818_v37  ;;  %v944_v38 = vadd.f32 %v943_v42, %v929_v41  ;;  %v790_v47 = vadd.f32 %v789_v46, %v646_v58  ;;  %v918_v58 = vpop.permute.xlu1 %917  ;;  %v966_v13 = vrot.slane %v961_v11, %v965_v9 }
 0x2b4   :  { %v821_v51 = vmax.f32 %v795_v36, 0.0 }
 0x2b5   :  { %v945_v50 = vadd.f32 %v944_v38, %v930_v35  ;;  %v820_v45 = vmax.f32 %v790_v47, 0.0  ;;  %v1191_v52 = vpop.f32.mrb[14].mxu1 }
 0x2b6   :  { %v805_v53 = vadd.f32 %v1191_v52, %v661_v3  ;;  %v799_v39 = vpop.f32.mrb[15].mxu1  ;;  %v933_v56 = vmul.f32 %v908_v40, %v821_v51 }
 0x2b7   :  { %v932_v54 = vmul.f32 %v903_v34, %v820_v45  ;;  %v946_v48 = vadd.f32 %v945_v50, %v931_v49  ;;  %v800_v55 = vadd.f32 %v799_v39, %v656_v28 }
 0x2b8   :  { %v823_v59 = vmax.f32 %v805_v53, 0.0 }
 0x2b9   :  { %v947_v57 = vadd.f32 %v946_v48, %v932_v54  ;;  %v822_v60 = vmax.f32 %v800_v55, 0.0 }
 0x2ba   :  { %v935_v0 = vmul.f32 %v918_v58, %v823_v59 }
 0x2bb   :  { %v934_v62 = vmul.f32 %v913_v61, %v822_v60  ;;  %v948_v63 = vadd.f32 %v947_v57, %v933_v56 }
 0x2bd   :  { %v949_v1 = vadd.f32 %v948_v63, %v934_v62 }
 0x2bf   :  { %v950_v4 = vadd.f32 %v949_v1, %v935_v0 }
 0x2c1   :  { %v951_v5 = vrot.slane %v950_v4, 4 }
 0x2c3   :  { %v952_v7 = vadd.f32 %v951_v5, %v950_v4 }
 0x2c5   :  { %v953_v8 = vrot.slane %v952_v7, 2 }
 0x2c7   :  { %v954_v10 = vadd.f32 %v953_v8, %v952_v7 }
 0x2c9   :  { %v955_v12 = vrot.slane %v954_v10, 1 }
 0x2cb   :  { %v956_v14 = vadd.f32 %v955_v12, %v954_v10 }
 0x2cd   :  { %v967_v15 = vadd.f32 %v966_v13, %v956_v14 }
 0x2cf   :  { %968 = vst [vmem:[#allocation3] sm:$0x1] %v967_v15 }
 0x2d0   :  { %1271 = shalt.err (!%p1268_p4)
}
 0x2d1   :  { %s1272_s19 = scalar_lea.hbm %s1705_s7, 16 }
 0x2d2   :  { %p1273_p5 = scmp.ne.s32.totalorder %s1705_s7, %s1272_s19  ;;  %p1276_p6 = scmp.lt.u32.totalorder %s1272_s19, %s1705_s7 }
 0x2d4   :  { %p1278_p7 = pnand %p1276_p6, %p1273_p5 }
 0x2d6   :  { %1281 = shalt.err (!%p1278_p7)
}
 0x2d7   :  { %978 = dma.vmem_to_hbm [thread:$0]  %s976_s14, 16, %s1705_s7, [#allocation4]  }
 0x2d8   :  { %1282 = dma.done.wait [#allocation4], 16  }
 0x2d9   :  { %1283 = vsyncadd [#allocation4], 4294967280 }
 0x2da   :  { %982 = vsyncpa [#allocation4], 1 }

</bundles_post_ra>
